<compile_context>
chip_gen: v7x
topology: tpu7x:2x2x1
jax: 0.10.0
libtpu: 0.0.40
codegen_flags: <defaults>
</compile_context>

<pallas_src>
import functools

import jax
import jax.numpy as jnp
from jax.experimental import pallas as pl
from jax.experimental.pallas import tpu as pltpu


def _round_up(x, m):
    return ((x + m - 1) // m) * m


def _leaky_relu(x, slope=0.1):
    # Module uses nn.LeakyReLU(0.1) explicitly (not the 0.01 default).
    return jnp.where(x > 0, x, slope * x)


def _mlp_kernel(*refs, apply_mask):
    if apply_mask:
        (d_ref, w1_ref, b1_ref, w2_ref, b2_ref, w3_ref, b3_ref,
         mask_ref, out_ref) = refs
    else:
        (d_ref, w1_ref, b1_ref, w2_ref, b2_ref, w3_ref, b3_ref,
         out_ref) = refs
        mask_ref = None

    # fc_1 (bf16 x bf16 -> f32 acc) + bias + LeakyReLU in f32.
    z = jnp.dot(d_ref[...], w1_ref[...], preferred_element_type=jnp.float32)
    z = _leaky_relu(z + b1_ref[...])

    # fc_2
    z = jnp.dot(z.astype(jnp.bfloat16), w2_ref[...],
                preferred_element_type=jnp.float32)
    z = _leaky_relu(z + b2_ref[...])

    # fc_3
    w = jnp.dot(z.astype(jnp.bfloat16), w3_ref[...],
                preferred_element_type=jnp.float32)
    w = w + b3_ref[...]

    # Dropout(0.3): mask is pre-scaled to {0, 1/(1-p)} in the wrapper.
    if mask_ref is not None:
        w = w * mask_ref[...]

    out_ref[...] = w.astype(out_ref.dtype)
    # TODO(synk): eval-mode path calls an external knapsack ILP solver per
    # batch row (knapsackModel.solve()); a combinatorial Gurobi solver has no
    # Pallas equivalent, so we return the pre-solver scores `w`.


def val_predict_net_forward(d, params, *, training=False, drop_p=0.3,
                            rng_key=None, block_b=None):
    """ValPredictNet MLP forward pass as a single fused Pallas kernel.

    d: [batch, num_feat] float32
    params: dict with w1t [F,H], b1 [1,H], w2t [H,H], b2 [1,H],
            w3t [H,R], b3 [1,R] (float32, PyTorch-Linear layout transposed).
    Returns: [batch, num_item] float32 pre-solver scores `w`.
    """
    d = jnp.asarray(d, jnp.float32)
    batch, num_feat = d.shape
    hidden = params["w1t"].shape[1]
    num_item = params["w3t"].shape[1]

    # Lane/sublane-aligned padded sizes.
    f_pad = _round_up(num_feat, 8)
    h_pad = _round_up(hidden, 128)     # 400 -> 512
    r_pad = _round_up(num_item, 128)   # 8   -> 128
    if block_b is None:
        block_b = min(128, _round_up(batch, 8))
    block_b = max(8, min(block_b, _round_up(batch, 8)))
    b_pad = _round_up(batch, block_b)

    def pad2(x, rows, cols, dtype):
        x = jnp.asarray(x, dtype)
        out = jnp.zeros((rows, cols), dtype)
        return out.at[:x.shape[0], :x.shape[1]].set(x)

    # Activations / weights in bf16 (MXU fast path), biases in f32 (epilogue).
    d_p = pad2(d, b_pad, f_pad, jnp.bfloat16)
    w1 = pad2(params["w1t"], f_pad, h_pad, jnp.bfloat16)
    b1 = pad2(params["b1"], 1, h_pad, jnp.float32)
    w2 = pad2(params["w2t"], h_pad, h_pad, jnp.bfloat16)
    b2 = pad2(params["b2"], 1, h_pad, jnp.float32)
    w3 = pad2(params["w3t"], h_pad, r_pad, jnp.bfloat16)
    b3 = pad2(params["b3"], 1, r_pad, jnp.float32)

    inputs = [d_p, w1, b1, w2, b2, w3, b3]
    in_specs = [
        pl.BlockSpec((block_b, f_pad), lambda i: (i, 0)),   # d: batch-tiled
        pl.BlockSpec((f_pad, h_pad), lambda i: (0, 0)),     # weights: resident
        pl.BlockSpec((1, h_pad), lambda i: (0, 0)),
        pl.BlockSpec((h_pad, h_pad), lambda i: (0, 0)),
        pl.BlockSpec((1, h_pad), lambda i: (0, 0)),
        pl.BlockSpec((h_pad, r_pad), lambda i: (0, 0)),
        pl.BlockSpec((1, r_pad), lambda i: (0, 0)),
    ]

    apply_mask = bool(training) and drop_p > 0.0
    if apply_mask:
        if rng_key is None:
            rng_key = jax.random.PRNGKey(0)
        keep = jax.random.bernoulli(rng_key, 1.0 - drop_p, (batch, num_item))
        mask = keep.astype(jnp.float32) * (1.0 / (1.0 - drop_p))
        mask_p = pad2(mask, b_pad, r_pad, jnp.float32)
        inputs.append(mask_p)
        in_specs.append(pl.BlockSpec((block_b, r_pad), lambda i: (i, 0)))

    # Scheduler hints.
    flops = 2 * b_pad * (f_pad * h_pad + h_pad * h_pad + h_pad * r_pad)
    bytes_accessed = (sum(int(x.size) * x.dtype.itemsize for x in inputs)
                      + b_pad * r_pad * 4)
    resident_bytes = sum(int(x.size) * x.dtype.itemsize for x in inputs[1:7])
    streamed_bytes = 2 * (block_b * f_pad * 2 + block_b * r_pad * 4
                          + (block_b * r_pad * 4 if apply_mask else 0))
    vmem_limit = int(min(100 * 2**20,
                         max(32 * 2**20, 4 * (resident_bytes + streamed_bytes))))

    kernel = functools.partial(_mlp_kernel, apply_mask=apply_mask)

    out_p = pl.pallas_call(
        kernel,
        out_shape=jax.ShapeDtypeStruct((b_pad, r_pad), jnp.float32),
        grid_spec=pltpu.PrefetchScalarGridSpec(
            num_scalar_prefetch=0,
            grid=(b_pad // block_b,),
            in_specs=in_specs,
            out_specs=pl.BlockSpec((block_b, r_pad), lambda i: (i, 0)),
        ),
        compiler_params=pltpu.CompilerParams(
            dimension_semantics=("parallel",),
            vmem_limit_bytes=vmem_limit,
        ),
        cost_estimate=pl.CostEstimate(
            flops=flops, transcendentals=0, bytes_accessed=bytes_accessed),
    )(*inputs)

    return out_p[:batch, :num_item]


def init_params(key, num_feat, num_item):
    """PyTorch-Linear-style init: U(-1/sqrt(fan_in), 1/sqrt(fan_in))."""
    hidden = 100 * num_feat
    ks = jax.random.split(key, 6)

    def lin(kw, kb, fan_in, fan_out):
        bound = 1.0 / jnp.sqrt(fan_in)
        w = jax.random.uniform(kw, (fan_in, fan_out), jnp.float32, -bound, bound)
        b = jax.random.uniform(kb, (1, fan_out), jnp.float32, -bound, bound)
        return w, b

    w1t, b1 = lin(ks[0], ks[1], num_feat, hidden)
    w2t, b2 = lin(ks[2], ks[3], hidden, hidden)
    w3t, b3 = lin(ks[4], ks[5], hidden, num_item)
    return dict(w1t=w1t, b1=b1, w2t=w2t, b2=b2, w3t=w3t, b3=b3)


def reference_forward_bf16(d, p):
    """Pure-JAX reference mirroring the kernel's bf16-matmul / f32-epilogue."""
    z = jnp.dot(d.astype(jnp.bfloat16), p["w1t"].astype(jnp.bfloat16),
                preferred_element_type=jnp.float32)
    z = _leaky_relu(z + p["b1"])
    z = jnp.dot(z.astype(jnp.bfloat16), p["w2t"].astype(jnp.bfloat16),
                preferred_element_type=jnp.float32)
    z = _leaky_relu(z + p["b2"])
    return jnp.dot(z.astype(jnp.bfloat16), p["w3t"].astype(jnp.bfloat16),
                   preferred_element_type=jnp.float32) + p["b3"]


if __name__ == "__main__":
    # Small shapes consistent with the module's constructor.
    num_knapsack = 2   # num_constraints (only used by the external solver)
    num_item = 8       # num_resources  -> fc_3 output dim
    num_feat = 4       # context_size   -> fc_1 input dim; hidden = 100*4 = 400
    batch = 64

    key = jax.random.PRNGKey(0)
    k_d, k_p, k_w, k_c, k_drop = jax.random.split(key, 5)

    d = jax.random.normal(k_d, (batch, num_feat), dtype=jnp.float32)
    params = init_params(k_p, num_feat, num_item)

    # Knapsack instance data (only consumed by the external ILP solver).
    _weights = jax.random.uniform(k_w, (num_knapsack, num_item), jnp.float32)
    _capacities = jax.random.uniform(k_c, (num_knapsack,), jnp.float32) * num_item

    # Eval-style scores (dropout = identity): check against a matching pure-JAX
    # reference (bf16 matmuls, f32 accumulation/epilogue).  block_b=32 gives a
    # 2-step grid so the batch pipeline is exercised.
    out_eval = val_predict_net_forward(d, params, training=False, block_b=32)
    out_eval = jax.block_until_ready(out_eval)
    ref = reference_forward_bf16(d, params)
    assert out_eval.shape == (batch, num_item)
    assert jnp.allclose(out_eval, ref, rtol=5e-3, atol=5e-3), "mismatch vs reference"

    # Training-style forward: inverted dropout via a pre-scaled mask.
    out_train = val_predict_net_forward(d, params, training=True,
                                        rng_key=k_drop, block_b=32)
    out_train = jax.block_until_ready(out_train)
    assert out_train.shape == (batch, num_item)
    zero_frac = float(jnp.mean(out_train == 0.0))
    assert 0.1 < zero_frac < 0.5, f"dropout zero fraction off: {zero_frac}"

    print("KERNEL_OK")
</pallas_src>

<mosaic_0001>
module attributes {stable_mosaic.version = 11 : i64} {
  func.func @_mlp_kernel(%arg0: i32, %arg1: memref<32x8xbf16, #tpu.memory_space<vmem>>, %arg2: memref<8x512xbf16, #tpu.memory_space<vmem>>, %arg3: memref<1x512xf32, #tpu.memory_space<vmem>>, %arg4: memref<512x512xbf16, #tpu.memory_space<vmem>>, %arg5: memref<1x512xf32, #tpu.memory_space<vmem>>, %arg6: memref<512x128xbf16, #tpu.memory_space<vmem>>, %arg7: memref<1x128xf32, #tpu.memory_space<vmem>>, %arg8: memref<32x128xf32, #tpu.memory_space<vmem>>) attributes {dimension_semantics = [#tpu.dimension_semantics<parallel>], iteration_bounds = array<i64: 2>, scalar_prefetch = 0 : i64, scratch_operands = 0 : i64, tpu.core_type = #tpu.core_type<tc>, window_params = [{transform_indices = @transform_0, window_bounds = array<i64: 32, 8>}, {pipeline_mode = #tpu.pipeline_mode<synchronous>, transform_indices = @transform_1, window_bounds = array<i64: 8, 512>}, {pipeline_mode = #tpu.pipeline_mode<synchronous>, transform_indices = @transform_2, window_bounds = array<i64: 1, 512>}, {pipeline_mode = #tpu.pipeline_mode<synchronous>, transform_indices = @transform_3, window_bounds = array<i64: 512, 512>}, {pipeline_mode = #tpu.pipeline_mode<synchronous>, transform_indices = @transform_4, window_bounds = array<i64: 1, 512>}, {pipeline_mode = #tpu.pipeline_mode<synchronous>, transform_indices = @transform_5, window_bounds = array<i64: 512, 128>}, {pipeline_mode = #tpu.pipeline_mode<synchronous>, transform_indices = @transform_6, window_bounds = array<i64: 1, 128>}, {transform_indices = @transform_7, window_bounds = array<i64: 32, 128>}]} {
    %c0 = arith.constant 0 : index
    %c0_0 = arith.constant 0 : index
    %0 = vector.load %arg1[%c0, %c0_0] : memref<32x8xbf16, #tpu.memory_space<vmem>>, vector<32x8xbf16>
    %c0_1 = arith.constant 0 : index
    %c0_2 = arith.constant 0 : index
    %1 = vector.load %arg2[%c0_1, %c0_2] : memref<8x512xbf16, #tpu.memory_space<vmem>>, vector<8x512xbf16>
    %cst = arith.constant dense<0.000000e+00> : vector<32x512xf32>
    %2 = tpu.matmul %0, %1, %cst {dimension_numbers = #tpu.dot_dimension_numbers<[1], [0], [0], [1], [0, 0, 1, 1], [], []>} : vector<32x8xbf16>, vector<8x512xbf16>, vector<32x512xf32> -> vector<32x512xf32>
    %c0_3 = arith.constant 0 : index
    %c0_4 = arith.constant 0 : index
    %3 = vector.load %arg3[%c0_3, %c0_4] : memref<1x512xf32, #tpu.memory_space<vmem>>, vector<1x512xf32>
    %4 = vector.broadcast %3 : vector<1x512xf32> to vector<32x512xf32>
    %5 = arith.addf %2, %4 : vector<32x512xf32>
    %cst_5 = arith.constant 0.000000e+00 : f32
    %6 = vector.broadcast %cst_5 : f32 to vector<32x512xf32>
    %7 = arith.cmpf ogt, %5, %6 : vector<32x512xf32>
    %cst_6 = arith.constant 1.000000e-01 : f32
    %8 = vector.broadcast %cst_6 : f32 to vector<32x512xf32>
    %9 = arith.mulf %8, %5 : vector<32x512xf32>
    %10 = arith.select %7, %5, %9 : vector<32x512xi1>, vector<32x512xf32>
    %11 = arith.truncf %10 : vector<32x512xf32> to vector<32x512xbf16>
    %c0_7 = arith.constant 0 : index
    %c0_8 = arith.constant 0 : index
    %12 = vector.load %arg4[%c0_7, %c0_8] : memref<512x512xbf16, #tpu.memory_space<vmem>>, vector<512x512xbf16>
    %cst_9 = arith.constant dense<0.000000e+00> : vector<32x512xf32>
    %13 = tpu.matmul %11, %12, %cst_9 {dimension_numbers = #tpu.dot_dimension_numbers<[1], [0], [0], [1], [0, 0, 1, 1], [], []>} : vector<32x512xbf16>, vector<512x512xbf16>, vector<32x512xf32> -> vector<32x512xf32>
    %c0_10 = arith.constant 0 : index
    %c0_11 = arith.constant 0 : index
    %14 = vector.load %arg5[%c0_10, %c0_11] : memref<1x512xf32, #tpu.memory_space<vmem>>, vector<1x512xf32>
    %15 = vector.broadcast %14 : vector<1x512xf32> to vector<32x512xf32>
    %16 = arith.addf %13, %15 : vector<32x512xf32>
    %cst_12 = arith.constant 0.000000e+00 : f32
    %17 = vector.broadcast %cst_12 : f32 to vector<32x512xf32>
    %18 = arith.cmpf ogt, %16, %17 : vector<32x512xf32>
    %cst_13 = arith.constant 1.000000e-01 : f32
    %19 = vector.broadcast %cst_13 : f32 to vector<32x512xf32>
    %20 = arith.mulf %19, %16 : vector<32x512xf32>
    %21 = arith.select %18, %16, %20 : vector<32x512xi1>, vector<32x512xf32>
    %22 = arith.truncf %21 : vector<32x512xf32> to vector<32x512xbf16>
    %c0_14 = arith.constant 0 : index
    %c0_15 = arith.constant 0 : index
    %23 = vector.load %arg6[%c0_14, %c0_15] : memref<512x128xbf16, #tpu.memory_space<vmem>>, vector<512x128xbf16>
    %cst_16 = arith.constant dense<0.000000e+00> : vector<32x128xf32>
    %24 = tpu.matmul %22, %23, %cst_16 {dimension_numbers = #tpu.dot_dimension_numbers<[1], [0], [0], [1], [0, 0, 1, 1], [], []>} : vector<32x512xbf16>, vector<512x128xbf16>, vector<32x128xf32> -> vector<32x128xf32>
    %c0_17 = arith.constant 0 : index
    %c0_18 = arith.constant 0 : index
    %25 = vector.load %arg7[%c0_17, %c0_18] : memref<1x128xf32, #tpu.memory_space<vmem>>, vector<1x128xf32>
    %26 = vector.broadcast %25 : vector<1x128xf32> to vector<32x128xf32>
    %27 = arith.addf %24, %26 : vector<32x128xf32>
    %c0_19 = arith.constant 0 : index
    %c0_20 = arith.constant 0 : index
    %28 = vector.load %arg8[%c0_19, %c0_20] : memref<32x128xf32, #tpu.memory_space<vmem>>, vector<32x128xf32>
    tpu.vector_store %arg8[%c0_19, %c0_20], %27 {strides = array<i32>} : memref<32x128xf32, #tpu.memory_space<vmem>>, vector<32x128xf32>,
    return
  }
  func.func @transform_0(%arg0: i32) -> (i32, i32) {
    %c0_i32 = arith.constant 0 : i32
    %c0_i32_0 = arith.constant 0 : i32
    return %arg0, %c0_i32 : i32, i32
  }
  func.func @transform_1(%arg0: i32) -> (i32, i32) {
    %c0_i32 = arith.constant 0 : i32
    %c0_i32_0 = arith.constant 0 : i32
    %c0_i32_1 = arith.constant 0 : i32
    return %c0_i32, %c0_i32_0 : i32, i32
  }
  func.func @transform_2(%arg0: i32) -> (i32, i32) {
    %c0_i32 = arith.constant 0 : i32
    %c0_i32_0 = arith.constant 0 : i32
    %c0_i32_1 = arith.constant 0 : i32
    return %c0_i32, %c0_i32_0 : i32, i32
  }
  func.func @transform_3(%arg0: i32) -> (i32, i32) {
    %c0_i32 = arith.constant 0 : i32
    %c0_i32_0 = arith.constant 0 : i32
    %c0_i32_1 = arith.constant 0 : i32
    return %c0_i32, %c0_i32_0 : i32, i32
  }
  func.func @transform_4(%arg0: i32) -> (i32, i32) {
    %c0_i32 = arith.constant 0 : i32
    %c0_i32_0 = arith.constant 0 : i32
    %c0_i32_1 = arith.constant 0 : i32
    return %c0_i32, %c0_i32_0 : i32, i32
  }
  func.func @transform_5(%arg0: i32) -> (i32, i32) {
    %c0_i32 = arith.constant 0 : i32
    %c0_i32_0 = arith.constant 0 : i32
    %c0_i32_1 = arith.constant 0 : i32
    return %c0_i32, %c0_i32_0 : i32, i32
  }
  func.func @transform_6(%arg0: i32) -> (i32, i32) {
    %c0_i32 = arith.constant 0 : i32
    %c0_i32_0 = arith.constant 0 : i32
    %c0_i32_1 = arith.constant 0 : i32
    return %c0_i32, %c0_i32_0 : i32, i32
  }
  func.func @transform_7(%arg0: i32) -> (i32, i32) {
    %c0_i32 = arith.constant 0 : i32
    %c0_i32_0 = arith.constant 0 : i32
    return %arg0, %c0_i32 : i32, i32
  }
}

</mosaic_0001>

<bundles_post_ra>
// kernel: tpu_custom_call.1
= control target key start
LH: loop header
LB: loop body
LE: loop exit
PB: predicated region body
PF: predicated region fallthrough
CT: control target
= control target key end

     0   :  { %12 = vsyncpa [#allocation3], 0  ;;  %s3110_s0 = inlined_call_operand.vmem [shape: bf16[64,8], index: 0, kind: input, shape index: {}]   ;;  %s3111_s1 = inlined_call_operand.vmem [shape: bf16[8,512], index: 1, kind: input, shape index: {}]   ;;  %s3112_s2 = inlined_call_operand.vmem [shape: f32[1,512], index: 2, kind: input, shape index: {}]   ;;  %s3113_s3 = inlined_call_operand.hbm [shape: bf16[512,512], index: 3, kind: input, shape index: {}]   ;;  %s3114_s4 = inlined_call_operand.vmem [shape: f32[1,512], index: 4, kind: input, shape index: {}]   ;;  %s3115_s5 = inlined_call_operand.hbm [shape: bf16[512,128], index: 5, kind: input, shape index: {}]   ;;  %s3116_s6 = inlined_call_operand.vmem [shape: f32[1,128], index: 6, kind: input, shape index: {}]   ;;  %s3117_s7 = inlined_call_operand.hbm [shape: f32[64,128], index: 7, kind: output, shape index: {}]  }
   0x1   :  { %13 = vsyncpa [#allocation6], 0 }
   0x2   :  { %14 = vsyncpa [#allocation4], 0 }
   0x3   :  { %16 = vsyncpa [#allocation4 + $0x1], 0  ;;  %s2815_s24 = smov 0   ;;  %s2817_s25 = smov 0  }
   0x4   :  { %s2819_s26 = smov 0   ;;  %s2821_s27 = smov 0  }
   0x5 LB: > { %s2836_s28 = sadd.s32 4294967295, %s2763_s27   ;;  %s2062_s29 = sadd.s32 4294967294, %s2763_s27   ;;  %s2763_s27 = sphi %s2821_s27, %s3137_s27   ;;  %s2759_s26 = sphi %s2819_s26, %s3136_s26   ;;  %s2755_s25 = sphi %s2817_s25, %s3135_s25   ;;  %s2751_s24 = sphi %s2815_s24, %s3134_s24  }
   0x6   : > { %s2840_s30 = sadd.s32 1, %s2763_s27   ;;  %s181_s8 = sadd.s32 1, %s2759_s26 }
   0x7   : > { %s178_s9 = ssub.s32 %s2763_s27, %s2840_s30  ;;  %p191_p0 = scmp.ne.s32.totalorder %s2759_s26, %s2755_s25 }
   0x8   : > { %p179_p1 = scmp.eq.s32.totalorder %s178_s9, 0  ;;  %p192_p2 = scmp.eq.s32.totalorder %s2836_s28, 1 }
   0x9   : > { %p197_p3 = scmp.ne.s32.totalorder %s2755_s25, %s2751_s24  ;;  %p198_p4 = scmp.eq.s32.totalorder %s2062_s29, 1 }
   0xa   : > { %s2851_s10 = scalar_select %p179_p1, %s2759_s26, %s181_s8  }
   0xb   : > { %p2853_p5 = por %p192_p2, %p191_p0  ;;  %p2857_p6 = por %p198_p4, %p197_p3 }
   0xc   : > { %3121 = sst [smem:[#allocation11_spill]] %s2851_s10  ;;  %p2063_p7 = scmp.ge.s32.totalorder %s2763_s27, 1 }
   0xd   : > { %s3122_s11 = scalar_select %p2853_p5, 1, 0 }
   0xe   : > { %s3123_s12 = scalar_select %p2857_p6, 1, 0 }
   0xf   : > { %p205_p8 = scmp.lt.s32.totalorder %s2763_s27, 3  ;;  %p3118_p9 = scmp.eq.s32.totalorder %s2836_s28, 0 }
  0x10   : > { %s2765_s14 = smov [#allocation2]   ;;  %s2766_s17 = smov [#allocation5]  }
  0x11   : > { %p2864_p10 = pnand %p2063_p7, %p205_p8  ;;  %s223_s15 = sshll.u32 %s2765_s14, 4  ;;  %s224_s15 = int_to_ptr.vmem [resolvable:$true] %s223_s15 }
  0x12   : > { %s239_s18 = sshll.u32 %s2766_s17, 4  ;;  %s2637_s21 = scalar_lea.hbm %s3113_s3, 16384  ;;  %s2876_s18 = int_to_ptr.vmem [resolvable:$true] %s239_s18 }
  0x13   : > { %s3124_s13 = scalar_select %p2864_p10, 1, 0 }
  0x14   : > { %p2350_p11 = pneg %p2864_p10  ;;  %p2638_p13 = scmp.ne.s32.totalorder %s3113_s3, %s2637_s21 }
  0x15   : > { %p2644_p3 = scmp.lt.u32.totalorder %s2637_s21, %s3113_s3 }
  0x16   : > { %p2872_p12 = pnand %p3118_p9, %p2350_p11 }
  0x18   : > { %p2639_p0 = pneg %p2872_p12 }
  0x1a   : > { %p2640_p1 = pnand %p2639_p0, %p2638_p13 }
  0x1c   : > { %p2641_p2 = pneg %p2640_p1 }
  0x1e   : > { %p2646_p4 = pnand %p2644_p3, %p2641_p2 }
  0x20   : > { %2649 = shalt.err (!%p2646_p4)
}
  0x21   : > { %s2650_s9 = scalar_lea.vmem %s224_s15, 16384  ;;  %p2658_p9 = scmp.lt.s32.totalorder %s224_s15, %s224_s15 }
  0x22   : > { %p2651_p7 = scmp.ne.s32.totalorder %s224_s15, %s2650_s9  ;;  %p2659_p6 = scmp.lt.s32.totalorder %s2650_s9, %s2650_s9 }
  0x24   : > { %p2653_p8 = pnand %p2651_p7, %p2639_p0  ;;  %p2660_p5 = por %p2659_p6, %p2658_p9 }
  0x26   : > { %p2654_p11 = pneg %p2653_p8 }
  0x28   : > { %p2661_p10 = pnand %p2660_p5, %p2654_p11 }
  0x2a   : > { %2664 = shalt.err (!%p2661_p10)
}
  0x2b   : > { %s2767_s14 = smov 256   ;;  %s2768_s17 = smov 16  }
  0x2c   : > { %2353 = dma.hbm_to_vmem [thread:$0]  (!%p2872_p12), %s3113_s3, 16384, %s224_s15, [#allocation3], %s2767_s14, %s2767_s14, %s2768_s17  }
  0x2d   : > { %s2665_s23 = scalar_lea.hbm %s3115_s5, 4096 }
  0x2e   : > { %p2666_p13 = scmp.ne.s32.totalorder %s3115_s5, %s2665_s23  ;;  %p2672_p9 = scmp.lt.u32.totalorder %s2665_s23, %s3115_s5 }
  0x30   : > { %p2668_p5 = pnand %p2666_p13, %p2639_p0 }
  0x32   : > { %p2669_p6 = pneg %p2668_p5 }
  0x34   : > { %p2674_p10 = pnand %p2672_p9, %p2669_p6 }
  0x36   : > { %2677 = shalt.err (!%p2674_p10)
}
  0x37   : > { %s2678_s15 = scalar_lea.vmem %s2876_s18, 4096  ;;  %p2686_p4 = scmp.lt.s32.totalorder %s2876_s18, %s2876_s18 }
  0x38   : > { %p2679_p1 = scmp.ne.s32.totalorder %s2876_s18, %s2678_s15  ;;  %p2687_p7 = scmp.lt.s32.totalorder %s2678_s15, %s2678_s15 }
  0x3a   : > { %p2681_p2 = pnand %p2679_p1, %p2639_p0  ;;  %p2688_p8 = por %p2687_p7, %p2686_p4 }
  0x3c   : > { %p2682_p3 = pneg %p2681_p2 }
  0x3e   : > { %p2689_p11 = pnand %p2688_p8, %p2682_p3 }
  0x40   : > { %2692 = shalt.err (!%p2689_p11)
}
  0x41   : > { %s2769_s10 = smov 64   ;;  %s2770_s14 = smov 4  }
  0x42   : > { %2356 = dma.hbm_to_vmem [thread:$0]  (!%p2872_p12), %s3115_s5, 4096, %s2876_s18, [#allocation6], %s2769_s10, %s2769_s10, %s2770_s14  }
  0x43   : > { %p3126_p13 = scmp.ne.s32.totalorder %s3124_s13, 0 }
  0x44   : > { %p3127_p0 = scmp.eq.s32.totalorder (!%p3126_p13), %s2836_s28, 0 }
  0x45   : > { %267 = sbr.rel (%p3126_p13) target bundleno = 846 (0x34e), region = 48 }
  0x4c   : > { %2738 = dma.done.wait (%p3127_p0), [#allocation3], 16384   ;;  %p3128_p5 = pmov %p3127_p0 }
  0x4d   : > { %p3129_p6 = pmov %p3127_p0 }
  0x4e   : > { %2740 = vsyncadd (%p3128_p5), [#allocation3], 4294950912 }
  0x4f   : > { %2742 = dma.done.wait (%p3129_p6), [#allocation6], 4096   ;;  %p3130_p9 = pmov %p3127_p0 }
  0x50   : > { %s2071_s16 = sshll.u32 %s2836_s28, 2  ;;  %v2771_v0 = vmov 0   ;;  %v315_v1 = vld [vmem:[%s3111_s1] sm:$0xff]  ;;  %vm366_vm0 = vcmask 1043456   ;;  %v316_v4 = vld [vmem:[%s3111_s1 + $0x8] sm:$0xff]  ;;  %vm359_vm1 = vcmask 64512  }
  0x51   : > { %2744 = vsyncadd (%p3130_p9), [#allocation6], 4294963200  ;;  %411 = vmatprep.mubr.bf16.mxu0 %v2771_v0  ;;  %p304_p12 = scmp.lt.s32.totalorder %s2071_s16, 7  ;;  %464 = vmatprep.mubr.bf16.mxu1 %v2771_v0  ;;  %v2076_v2 = vcombine.high %v315_v1, %v315_v1  ;;  %v2075_v3 = vcombine.low %v315_v1, %v315_v1  ;;  %v2078_v7 = vcombine.high %v316_v4, %v316_v4  ;;  %v2415_v9 = vld [vmem:[#allocation2 + $0x4] ss:$16 sps:$4 sm:$0xff]   ;;  %s300_s17 = sand.u32 1, %s2755_s25  }
  0x52   : > { %v2077_v8 = vcombine.low %v316_v4, %v316_v4  ;;  %v2413_v10 = vld [vmem:[#allocation2] ss:$16 sps:$4 sm:$0xff]   ;;  %v2418_v12 = vld [vmem:[#allocation2 + $0xc] ss:$16 sps:$4 sm:$0xff]   ;;  %v2416_v13 = vld [vmem:[#allocation2 + $0x8] ss:$16 sps:$4 sm:$0xff]  }
  0x53   : > { %s3139_s16 = smov (!%p304_p12, %s2071_s16), 7  ;;  %2079 = vmatprep.subr.msk.bf16.mxu0 %vm366_vm0, %v2076_v2  ;;  %v368_v5 = vsel %vm366_vm0, %v2075_v3, 0  ;;  %2082 = vmatprep.subr.msk.bf16.mxu1 %vm366_vm0, %v2078_v7  ;;  %v2421_v14 = vld [vmem:[#allocation2 + $0x24] ss:$16 sps:$4 sm:$0xff]   ;;  %v2424_v15 = vld [vmem:[#allocation2 + $0x2c] ss:$16 sps:$4 sm:$0xff]  }
  0x54   : > { %s2072_s13 = sshll.u32 %s3139_s16, 2  ;;  %380 = vmatpush1.bf16.msra.mxu0 %v368_v5  ;;  %v374_v11 = vsel %vm366_vm0, %v2077_v8, 0  ;;  %v2419_v16 = vld [vmem:[#allocation2 + $0x20] ss:$16 sps:$4 sm:$0xff]   ;;  %v2427_v17 = vld [vmem:[#allocation2 + $0x44] ss:$16 sps:$4 sm:$0xff]  }
  0x55   : > { %s2939_s21 = scalar_lea.vmem %s3110_s0, %s2072_s13  ;;  %1331 = vmatprep.subr.bf16.mxu0 %v2415_v9  ;;  %433 = vmatpush1.bf16.msra.mxu1 %v374_v11  ;;  %v2422_v18 = vld [vmem:[#allocation2 + $0x28] ss:$16 sps:$4 sm:$0xff]   ;;  %v2430_v20 = vld [vmem:[#allocation2 + $0x4c] ss:$16 sps:$4 sm:$0xff]   ;;  %v2425_v21 = vld [vmem:[#allocation2 + $0x40] ss:$16 sps:$4 sm:$0xff]  }
  0x56   : > { %v2409_v6 = vld [vmem:[%s2939_s21] sm:$0xff]   ;;  %1437 = vmatprep.subr.bf16.mxu1 %v2418_v12  ;;  %v2410_v19 = vld [vmem:[%s2939_s21 + $0x8] sm:$0xff]   ;;  %s2070_s13 = sshll.u32 %s300_s17, 5  ;;  %s2251_s21 = sshll.u32 %s2836_s28, 9 }
  0x57   : > { %2080 = vmatmul.mubr.msk.bf16.vlgmr.msra.gmra.mrb[0].mxu0 %vm359_vm1, %v2409_v6  ;;  %v2433_v22 = vld [vmem:[#allocation2 + $0x64] ss:$16 sps:$4 sm:$0xff]   ;;  %v2428_v23 = vld [vmem:[#allocation2 + $0x48] ss:$16 sps:$4 sm:$0xff]   ;;  %v2436_v24 = vld [vmem:[#allocation2 + $0x6c] ss:$16 sps:$4 sm:$0xff]   ;;  %s3065_s29 = scalar_lea.hbm %s3117_s7, %s2251_s21 }
  0x58   : > { %421 = vmatprep.mubr.bf16.mxu0 %v2771_v0  ;;  %1332 = vmatpush1.bf16.msra.mxu0 %v2413_v10  ;;  %v2431_v25 = vld [vmem:[#allocation2 + $0x60] ss:$16 sps:$4 sm:$0xff]   ;;  %v2439_v26 = vld [vmem:[#allocation2 + $0x84] ss:$16 sps:$4 sm:$0xff]   ;;  %v2434_v27 = vld [vmem:[#allocation2 + $0x68] ss:$16 sps:$4 sm:$0xff]  }
  0x59   : > { %2083 = vmatmul.mubr.msk.bf16.vlgmr.msra.gmra.mrb[0].mxu1 %vm359_vm1, %v2409_v6  ;;  %1333 = vmatprep.subr.bf16.mxu0 %v2421_v14  ;;  %v2442_v28 = vld [vmem:[#allocation2 + $0x8c] ss:$16 sps:$4 sm:$0xff]   ;;  %v2437_v29 = vld [vmem:[#allocation2 + $0x80] ss:$16 sps:$4 sm:$0xff]   ;;  %v2445_v30 = vld [vmem:[#allocation2 + $0xa4] ss:$16 sps:$4 sm:$0xff]  }
  0x5a   : > { %474 = vmatprep.mubr.bf16.mxu1 %v2771_v0  ;;  %1438 = vmatpush1.bf16.msra.mxu1 %v2416_v13  ;;  %v2440_v31 = vld [vmem:[#allocation2 + $0x88] ss:$16 sps:$4 sm:$0xff]   ;;  %v2448_v32 = vld [vmem:[#allocation2 + $0xac] ss:$16 sps:$4 sm:$0xff]   ;;  %v2443_v33 = vld [vmem:[#allocation2 + $0xa0] ss:$16 sps:$4 sm:$0xff]   ;;  %v319_v13 = vlaneseq }
  0x5b   : > { %1439 = vmatprep.subr.bf16.mxu1 %v2424_v15  ;;  %v2451_v34 = vld [vmem:[#allocation2 + $0xc4] ss:$16 sps:$4 sm:$0xff]   ;;  %v2446_v35 = vld [vmem:[#allocation2 + $0xa8] ss:$16 sps:$4 sm:$0xff]   ;;  %v2454_v36 = vld [vmem:[#allocation2 + $0xcc] ss:$16 sps:$4 sm:$0xff]  }
  0x5c   : > { %1334 = vmatpush1.bf16.msra.mxu0 %v2419_v16  ;;  %v2449_v37 = vld [vmem:[#allocation2 + $0xc0] ss:$16 sps:$4 sm:$0xff]   ;;  %v2457_v38 = vld [vmem:[#allocation2 + $0xe4] ss:$16 sps:$4 sm:$0xff]   ;;  %v2452_v39 = vld [vmem:[#allocation2 + $0xc8] ss:$16 sps:$4 sm:$0xff]  }
  0x5d   : > { %1335 = vmatprep.subr.bf16.mxu0 %v2427_v17  ;;  %v2460_v40 = vld [vmem:[#allocation2 + $0xec] ss:$16 sps:$4 sm:$0xff]   ;;  %v2455_v41 = vld [vmem:[#allocation2 + $0xe0] ss:$16 sps:$4 sm:$0xff]   ;;  %v2463_v42 = vld [vmem:[#allocation2 + $0x104] ss:$16 sps:$4 sm:$0xff]  }
  0x5e   : > { %1440 = vmatpush1.bf16.msra.mxu1 %v2422_v18  ;;  %v2458_v43 = vld [vmem:[#allocation2 + $0xe8] ss:$16 sps:$4 sm:$0xff]   ;;  %v2466_v44 = vld [vmem:[#allocation2 + $0x10c] ss:$16 sps:$4 sm:$0xff]   ;;  %v2461_v45 = vld [vmem:[#allocation2 + $0x100] ss:$16 sps:$4 sm:$0xff]  }
  0x5f   : > { %2081 = vmatmul.mubr.msk.bf16.gmra.mrb[4].mxu0 %vm359_vm1, %v2410_v19  ;;  %1441 = vmatprep.subr.bf16.mxu1 %v2430_v20  ;;  %v2469_v46 = vld [vmem:[#allocation2 + $0x124] ss:$16 sps:$4 sm:$0xff]   ;;  %v2464_v47 = vld [vmem:[#allocation2 + $0x108] ss:$16 sps:$4 sm:$0xff]   ;;  %v2467_v48 = vld [vmem:[#allocation2 + $0x120] ss:$16 sps:$4 sm:$0xff]  }
  0x60   : > { %1336 = vmatpush1.bf16.msra.mxu0 %v2425_v21  ;;  %v2472_v49 = vld [vmem:[#allocation2 + $0x12c] ss:$16 sps:$4 sm:$0xff]   ;;  %v2470_v50 = vld [vmem:[#allocation2 + $0x128] ss:$16 sps:$4 sm:$0xff]   ;;  %v2475_v51 = vld [vmem:[#allocation2 + $0x144] ss:$16 sps:$4 sm:$0xff]  }
  0x61   : > { %2084 = vmatmul.mubr.msk.bf16.gmra.mrb[4].mxu1 %vm359_vm1, %v2410_v19  ;;  %1337 = vmatprep.subr.bf16.mxu0 %v2433_v22  ;;  %v2478_v52 = vld [vmem:[#allocation2 + $0x14c] ss:$16 sps:$4 sm:$0xff]   ;;  %v2473_v53 = vld [vmem:[#allocation2 + $0x140] ss:$16 sps:$4 sm:$0xff]   ;;  %v2481_v54 = vld [vmem:[#allocation2 + $0x164] ss:$16 sps:$4 sm:$0xff]  }
  0x62   : > { %1442 = vmatpush1.bf16.msra.mxu1 %v2428_v23  ;;  %v2476_v55 = vld [vmem:[#allocation2 + $0x148] ss:$16 sps:$4 sm:$0xff]   ;;  %v2484_v56 = vld [vmem:[#allocation2 + $0x16c] ss:$16 sps:$4 sm:$0xff]   ;;  %v2479_v57 = vld [vmem:[#allocation2 + $0x160] ss:$16 sps:$4 sm:$0xff]  }
  0x63   : > { %1443 = vmatprep.subr.bf16.mxu1 %v2436_v24  ;;  %v2487_v58 = vld [vmem:[#allocation2 + $0x184] ss:$16 sps:$4 sm:$0xff]   ;;  %v2482_v59 = vld [vmem:[#allocation2 + $0x168] ss:$16 sps:$4 sm:$0xff]   ;;  %v2490_v60 = vld [vmem:[#allocation2 + $0x18c] ss:$16 sps:$4 sm:$0xff]  }
  0x64   : > { %1338 = vmatpush1.bf16.msra.mxu0 %v2431_v25  ;;  %v2485_v61 = vld [vmem:[#allocation2 + $0x180] ss:$16 sps:$4 sm:$0xff]   ;;  %v2493_v62 = vld [vmem:[#allocation2 + $0x1a4] ss:$16 sps:$4 sm:$0xff]   ;;  %v2488_v63 = vld [vmem:[#allocation2 + $0x188] ss:$16 sps:$4 sm:$0xff]  }
  0x65   : > { %1339 = vmatprep.subr.bf16.mxu0 %v2439_v26  ;;  %v2496_v0 = vld [vmem:[#allocation2 + $0x1ac] ss:$16 sps:$4 sm:$0xff]   ;;  %v2491_v1 = vld [vmem:[#allocation2 + $0x1a0] ss:$16 sps:$4 sm:$0xff]   ;;  %v2494_v2 = vld [vmem:[#allocation2 + $0x1a8] ss:$16 sps:$4 sm:$0xff]  }
  0x66   : > { %1444 = vmatpush1.bf16.msra.mxu1 %v2434_v27  ;;  %v2499_v3 = vld [vmem:[#allocation2 + $0x1c4] ss:$16 sps:$4 sm:$0xff]   ;;  %v2502_v4 = vld [vmem:[#allocation2 + $0x1cc] ss:$16 sps:$4 sm:$0xff]   ;;  %v2497_v5 = vld [vmem:[#allocation2 + $0x1c0] ss:$16 sps:$4 sm:$0xff]  }
  0x67   : > { %1445 = vmatprep.subr.bf16.mxu1 %v2442_v28  ;;  %v2500_v6 = vld [vmem:[#allocation2 + $0x1c8] ss:$16 sps:$4 sm:$0xff]   ;;  %v2505_v7 = vld [vmem:[#allocation2 + $0x1e4] ss:$16 sps:$4 sm:$0xff]   ;;  %v2508_v8 = vld [vmem:[#allocation2 + $0x1ec] ss:$16 sps:$4 sm:$0xff]  }
  0x68   : > { %1340 = vmatpush1.bf16.msra.mxu0 %v2437_v29  ;;  %v2503_v9 = vld [vmem:[#allocation2 + $0x1e0] ss:$16 sps:$4 sm:$0xff]   ;;  %v2506_v10 = vld [vmem:[#allocation2 + $0x1e8] ss:$16 sps:$4 sm:$0xff]   ;;  %v2511_v11 = vld [vmem:[#allocation2 + $0x204] ss:$16 sps:$4 sm:$0xff]  }
  0x69   : > { %1341 = vmatprep.subr.bf16.mxu0 %v2445_v30  ;;  %v2514_v12 = vld [vmem:[#allocation2 + $0x20c] ss:$16 sps:$4 sm:$0xff]   ;;  %v2953_v14 = vshrl.u32 %v319_v13, 7  ;;  %v317_v16 = vld [vmem:[%s3112_s2] sm:$0xf]  ;;  %s302_s18 = scalar_lea.vmem [#allocation7], %s2070_s13 }
  0x6a   : > { %1446 = vmatpush1.bf16.msra.mxu1 %v2440_v31  ;;  %v2523_v13 = vld [vmem:[#allocation2 + $0x244] ss:$16 sps:$4 sm:$0xff]   ;;  %s1978_s20 = sshll.u32 %s302_s18, 4  ;;  %s3069_s8 = scalar_lea.sflag [#allocation4], %s300_s17  ;;  %s3060_s20 = int_to_ptr.vmem [resolvable:$true] %s1978_s20 }
  0x6b   : > { %1447 = vmatprep.subr.bf16.mxu1 %v2448_v32  ;;  %v321_v15 = vsub.s32 0, %v2953_v14  ;;  %v325_v17 = vsub.s32 1, %v2953_v14  ;;  %v329_v18 = vsub.s32 2, %v2953_v14  ;;  %v333_v19 = vsub.s32 3, %v2953_v14  ;;  %s2693_s9 = scalar_lea.vmem %s3060_s20, 512  ;;  %p3131_p1 = scmp.ne.s32.totalorder %s3122_s11, 0 }
  0x6c   : > { %1342 = vmatpush1.bf16.msra.mxu0 %v2443_v33  ;;  %p2694_p10 = scmp.ne.s32.totalorder %s3060_s20, %s2693_s9  ;;  %s2772_s28 = smov [#allocation7]  }
  0x6d   : > { %1343 = vmatprep.subr.bf16.mxu0 %v2451_v34  ;;  %v322_v20 = vrot.slane %v317_v16, %v321_v15  ;;  %v2966_v21 = vrot.slane %v317_v16, %v325_v17  ;;  %v2970_v22 = vrot.slane %v317_v16, %v329_v18  ;;  %v2974_v24 = vrot.slane %v317_v16, %v333_v19  ;;  %s2697_s15 = sshll.u32 %s2772_s28, 4  ;;  %s2698_s15 = int_to_ptr.vmem [resolvable:$false] %s2697_s15 }
  0x6e   : > { %1448 = vmatpush1.bf16.msra.mxu1 %v2446_v35  ;;  %p2695_p2 = pnand %p2694_p10, %p3131_p1  ;;  %s2699_s10 = scalar_lea.vmem %s2698_s15, 1024 }
  0x6f   : > { %1449 = vmatprep.subr.bf16.mxu1 %v2454_v36  ;;  %p2700_p4 = scmp.lt.s32.totalorder %s3060_s20, %s2698_s15  ;;  %p2701_p7 = scmp.lt.s32.totalorder %s2699_s10, %s2693_s9 }
  0x70   : > { %1344 = vmatpush1.bf16.msra.mxu0 %v2449_v37  ;;  %p2696_p3 = pneg %p2695_p2 }
  0x71   : > { %1345 = vmatprep.subr.bf16.mxu0 %v2457_v38  ;;  %p2702_p8 = por %p2701_p7, %p2700_p4 }
  0x72   : > { %1450 = vmatpush1.bf16.msra.mxu1 %v2452_v39 }
  0x73   : > { %1451 = vmatprep.subr.bf16.mxu1 %v2460_v40  ;;  %p2703_p11 = pnand %p2702_p8, %p2696_p3 }
  0x74   : > { %1346 = vmatpush1.bf16.msra.mxu0 %v2455_v41 }
  0x75   : > { %1347 = vmatprep.subr.bf16.mxu0 %v2463_v42 }
  0x76   : > { %1452 = vmatpush1.bf16.msra.mxu1 %v2458_v43 }
  0x77   : > { %1453 = vmatprep.subr.bf16.mxu1 %v2466_v44 }
  0x78   : > { %1348 = vmatpush1.bf16.msra.mxu0 %v2461_v45 }
  0x79   : > { %1349 = vmatprep.subr.bf16.mxu0 %v2469_v46  ;;  %v2509_v46 = vld [vmem:[#allocation2 + $0x200] ss:$16 sps:$4 sm:$0xff]  }
  0x7a   : > { %1454 = vmatpush1.bf16.msra.mxu1 %v2464_v47 }
  0x7b   : > { %1455 = vmatprep.subr.bf16.mxu1 %v2472_v49 }
  0x7c   : > { %1350 = vmatpush1.bf16.msra.mxu0 %v2467_v48 }
  0x7d   : > { %1351 = vmatprep.subr.bf16.mxu0 %v2475_v51  ;;  %v2512_v51 = vld [vmem:[#allocation2 + $0x208] ss:$16 sps:$4 sm:$0xff]  }
  0x7e   : > { %1456 = vmatpush1.bf16.msra.mxu1 %v2470_v50 }
  0x7f   : > { %1457 = vmatprep.subr.bf16.mxu1 %v2478_v52  ;;  %v2517_v52 = vld [vmem:[#allocation2 + $0x224] ss:$16 sps:$4 sm:$0xff]  }
  0x80   : > { %1352 = vmatpush1.bf16.msra.mxu0 %v2473_v53 }
  0x81   : > { %1353 = vmatprep.subr.bf16.mxu0 %v2481_v54 }
  0x82   : > { %1458 = vmatpush1.bf16.msra.mxu1 %v2476_v55 }
  0x83   : > { %1459 = vmatprep.subr.bf16.mxu1 %v2484_v56 }
  0x84   : > { %1354 = vmatpush1.bf16.msra.mxu0 %v2479_v57  ;;  %v2520_v57 = vld [vmem:[#allocation2 + $0x22c] ss:$16 sps:$4 sm:$0xff]  }
  0x85   : > { %1355 = vmatprep.subr.bf16.mxu0 %v2487_v58 }
  0x86   : > { %1460 = vmatpush1.bf16.msra.mxu1 %v2482_v59 }
  0x87   : > { %1461 = vmatprep.subr.bf16.mxu1 %v2490_v60 }
  0x88   : > { %1356 = vmatpush1.bf16.msra.mxu0 %v2485_v61 }
  0x89   : > { %1357 = vmatprep.subr.bf16.mxu0 %v2493_v62 }
  0x8a   : > { %1462 = vmatpush1.bf16.msra.mxu1 %v2488_v63 }
  0x8b   : > { %1463 = vmatprep.subr.bf16.mxu1 %v2496_v0 }
  0x8c   : > { %1358 = vmatpush1.bf16.msra.mxu0 %v2491_v1 }
  0x8d   : > { %1359 = vmatprep.subr.bf16.mxu0 %v2499_v3 }
  0x8e   : > { %1464 = vmatpush1.bf16.msra.mxu1 %v2494_v2  ;;  %v2515_v2 = vld [vmem:[#allocation2 + $0x220] ss:$16 sps:$4 sm:$0xff]  }
  0x8f   : > { %1465 = vmatprep.subr.bf16.mxu1 %v2502_v4 }
  0x90   : > { %1360 = vmatpush1.bf16.msra.mxu0 %v2497_v5 }
  0x91   : > { %1361 = vmatprep.subr.bf16.mxu0 %v2505_v7 }
  0x92   : > { %1466 = vmatpush1.bf16.msra.mxu1 %v2500_v6 }
  0x93   : > { %1467 = vmatprep.subr.bf16.mxu1 %v2508_v8  ;;  %v2518_v8 = vld [vmem:[#allocation2 + $0x228] ss:$16 sps:$4 sm:$0xff]  }
  0x94   : > { %1362 = vmatpush1.bf16.msra.mxu0 %v2503_v9 }
  0x95   : > { %1384 = vmatprep.subr.bf16.mxu0 %v2511_v11 }
  0x96   : > { %1468 = vmatpush1.bf16.msra.mxu1 %v2506_v10 }
  0x97   : > { %1490 = vmatprep.subr.bf16.mxu1 %v2514_v12 }
 0x12a   : > { %v413_v23 = vpop.f32.mrb[0].mxu0 }
 0x12b   : > { %v414_v25 = vadd.f32 %v413_v23, %v322_v20  ;;  %v415_v26 = vpop.f32.mrb[1].mxu0 }
 0x12c   : > { %v416_v27 = vadd.f32 %v415_v26, %v2966_v21  ;;  %v417_v28 = vpop.f32.mrb[2].mxu0  ;;  %v466_v29 = vpop.f32.mrb[0].mxu1  ;;  %v2526_v26 = vld [vmem:[#allocation2 + $0x24c] ss:$16 sps:$4 sm:$0xff]  }
 0x12d   : > { %vm485_vm2 = vcmp.gt.f32.partialorder %v414_v25, 0.0  ;;  %v501_v30 = vmul.f32 0.1, %v414_v25  ;;  %v418_v31 = vadd.f32 %v417_v28, %v322_v20  ;;  %v419_v32 = vpop.f32.mrb[3].mxu0  ;;  %v467_v33 = vadd.f32 %v466_v29, %v2970_v22  ;;  %v468_v34 = vpop.f32.mrb[1].mxu1 }
 0x12e   : > { %vm486_vm3 = vcmp.gt.f32.partialorder %v416_v27, 0.0  ;;  %v502_v35 = vmul.f32 0.1, %v416_v27  ;;  %v420_v36 = vadd.f32 %v419_v32, %v2966_v21  ;;  %v469_v37 = vadd.f32 %v468_v34, %v2974_v24  ;;  %v470_v38 = vpop.f32.mrb[2].mxu1  ;;  %v2521_v32 = vld [vmem:[#allocation2 + $0x240] ss:$16 sps:$4 sm:$0xff]  }
 0x12f   : > { %v517_v39 = vsel %vm485_vm2, %v414_v25, %v501_v30  ;;  %vm489_vm4 = vcmp.gt.f32.partialorder %v418_v31, 0.0  ;;  %v505_v40 = vmul.f32 0.1, %v418_v31  ;;  %vm487_vm5 = vcmp.gt.f32.partialorder %v467_v33, 0.0  ;;  %v472_v41 = vpop.f32.mrb[3].mxu1 }
 0x130   : > { %vm490_vm6 = vcmp.gt.f32.partialorder %v420_v36, 0.0  ;;  %v506_v42 = vmul.f32 0.1, %v420_v36  ;;  %v518_v43 = vsel %vm486_vm3, %v416_v27, %v502_v35  ;;  %v503_v44 = vmul.f32 0.1, %v467_v33 }
 0x131   : > { %v521_v45 = vsel %vm489_vm4, %v418_v31, %v505_v40  ;;  %vm488_vm7 = vcmp.gt.f32.partialorder %v469_v37, 0.0  ;;  %v504_v47 = vmul.f32 0.1, %v469_v37  ;;  %v471_v48 = vadd.f32 %v470_v38, %v2970_v22  ;;  %v2529_v40 = vld [vmem:[#allocation2 + $0x264] ss:$16 sps:$4 sm:$0xff]  }
 0x132   : > { %v533_v49 = vpack.c.bf16 %v521_v45, %v517_v39  ;;  %v522_v50 = vsel %vm490_vm6, %v420_v36, %v506_v42  ;;  %v423_v53 = vpop.f32.mrb[4].mxu0  ;;  %v519_v54 = vsel %vm487_vm5, %v467_v33, %v503_v44  ;;  %v2983_v55 = vadd.f32 %v472_v41, %v2974_v24  ;;  %v2524_v36 = vld [vmem:[#allocation2 + $0x248] ss:$16 sps:$4 sm:$0xff]   ;;  %v2532_v41 = vld [vmem:[#allocation2 + $0x26c] ss:$16 sps:$4 sm:$0xff]  }
 0x133   : > { %v534_v56 = vpack.c.bf16 %v522_v50, %v518_v43  ;;  %v424_v58 = vadd.f32 %v423_v53, %v322_v20  ;;  %v425_v59 = vpop.f32.mrb[5].mxu0  ;;  %vm491_vm8 = vcmp.gt.f32.partialorder %v471_v48, 0.0  ;;  %v507_v60 = vmul.f32 0.1, %v471_v48  ;;  %v2535_v50 = vld [vmem:[#allocation2 + $0x284] ss:$16 sps:$4 sm:$0xff]  }
 0x134   : > { %v426_v61 = vadd.f32 %v425_v59, %v2966_v21  ;;  %v427_v62 = vpop.f32.mrb[6].mxu0  ;;  %vm492_vm9 = vcmp.gt.f32.partialorder %v2983_v55, 0.0  ;;  %v508_v63 = vmul.f32 0.1, %v2983_v55  ;;  %v476_v0 = vpop.f32.mrb[4].mxu1  ;;  %v520_v1 = vsel %vm488_vm7, %v469_v37, %v504_v47 }
 0x135   : > { %1363 = vmatprep.mubr.bf16.mxu0 %v534_v56  ;;  %1469 = vmatprep.mubr.bf16.mxu1 %v534_v56  ;;  %vm493_vm10 = vcmp.gt.f32.partialorder %v424_v58, 0.0  ;;  %v509_v3 = vmul.f32 0.1, %v424_v58  ;;  %v428_v4 = vadd.f32 %v427_v62, %v322_v20  ;;  %v429_v5 = vpop.f32.mrb[7].mxu0  ;;  %v523_v6 = vsel %vm491_vm8, %v471_v48, %v507_v60  ;;  %v478_v7 = vpop.f32.mrb[5].mxu1 }
 0x136   : > { %1364 = vmatmul.mubr.bf16.vlgmr.msra.gmra.mrb[8].mxu0 %v533_v49  ;;  %1470 = vmatmul.mubr.bf16.vlgmr.msra.gmra.mrb[8].mxu1 %v533_v49  ;;  %vm494_vm11 = vcmp.gt.f32.partialorder %v426_v61, 0.0  ;;  %v510_v9 = vmul.f32 0.1, %v426_v61  ;;  %v430_v10 = vadd.f32 %v429_v5, %v2966_v21  ;;  %v2990_v11 = vpack.c.bf16 %v523_v6, %v519_v54  ;;  %v480_v12 = vpop.f32.mrb[6].mxu1  ;;  %v2527_v47 = vld [vmem:[#allocation2 + $0x260] ss:$16 sps:$4 sm:$0xff]  }
 0x137   : > { %1385 = vmatpush1.bf16.msra.mxu0 %v2509_v46  ;;  %1491 = vmatpush1.bf16.msra.mxu1 %v2512_v51  ;;  %vm497_vm12 = vcmp.gt.f32.partialorder %v428_v4, 0.0  ;;  %v513_v16 = vmul.f32 0.1, %v428_v4  ;;  %v525_v20 = vsel %vm493_vm10, %v424_v58, %v509_v3  ;;  %v477_v23 = vadd.f32 %v476_v0, %v2970_v22  ;;  %v482_v25 = vpop.f32.mrb[7].mxu1  ;;  %v2530_v48 = vld [vmem:[#allocation2 + $0x268] ss:$16 sps:$4 sm:$0xff]  }
 0x138   : > { %1386 = vmatprep.subr.bf16.mxu0 %v2517_v52  ;;  %1492 = vmatprep.subr.bf16.mxu1 %v2520_v57  ;;  %vm498_vm13 = vcmp.gt.f32.partialorder %v430_v10, 0.0  ;;  %v514_v27 = vmul.f32 0.1, %v430_v10  ;;  %v526_v21 = vsel %vm494_vm11, %v426_v61, %v510_v9  ;;  %v479_v28 = vadd.f32 %v478_v7, %v2974_v24  ;;  %v2538_v51 = vld [vmem:[#allocation2 + $0x28c] ss:$16 sps:$4 sm:$0xff]  }
 0x139   : > { %v529_v29 = vsel %vm497_vm12, %v428_v4, %v513_v16  ;;  %vm495_vm14 = vcmp.gt.f32.partialorder %v477_v23, 0.0  ;;  %v511_v30 = vmul.f32 0.1, %v477_v23  ;;  %v481_v31 = vadd.f32 %v480_v12, %v2970_v22  ;;  %v2533_v53 = vld [vmem:[#allocation2 + $0x280] ss:$16 sps:$4 sm:$0xff]  }
 0x13a   : > { %v530_v33 = vsel %vm498_vm13, %v430_v10, %v514_v27  ;;  %v537_v34 = vpack.c.bf16 %v529_v29, %v525_v20  ;;  %vm496_vm15 = vcmp.gt.f32.partialorder %v479_v28, 0.0  ;;  %v512_v35 = vmul.f32 0.1, %v479_v28  ;;  %v2536_v54 = vld [vmem:[#allocation2 + $0x288] ss:$16 sps:$4 sm:$0xff]  }
 0x13b   : > { %1387 = vmatpush1.bf16.msra.mxu0 %v2515_v2  ;;  %1493 = vmatpush1.bf16.msra.mxu1 %v2518_v8  ;;  %v538_v37 = vpack.c.bf16 %v530_v33, %v526_v21  ;;  %vm499_vm0 = vcmp.gt.f32.partialorder %v481_v31, 0.0  ;;  %v515_v38 = vmul.f32 0.1, %v481_v31  ;;  %v483_v39 = vadd.f32 %v482_v25, %v2974_v24  ;;  %v2544_v56 = vld [vmem:[#allocation2 + $0x2ac] ss:$16 sps:$4 sm:$0xff]  }
 0x13c   : > { %1388 = vmatprep.subr.bf16.mxu0 %v2523_v13  ;;  %1494 = vmatprep.subr.bf16.mxu1 %v2526_v26  ;;  %v524_v22 = vsel %vm492_vm9, %v2983_v55, %v508_v63  ;;  %v528_v42 = vsel %vm496_vm15, %v479_v28, %v512_v35  ;;  %v527_v43 = vsel %vm495_vm14, %v477_v23, %v511_v30  ;;  %v2541_v55 = vld [vmem:[#allocation2 + $0x2a4] ss:$16 sps:$4 sm:$0xff]   ;;  %v2539_v57 = vld [vmem:[#allocation2 + $0x2a0] ss:$16 sps:$4 sm:$0xff]   ;;  %v2542_v58 = vld [vmem:[#allocation2 + $0x2a8] ss:$16 sps:$4 sm:$0xff]  }
 0x13d   : > { %1373 = vmatprep.mubr.bf16.mxu0 %v538_v37  ;;  %1479 = vmatprep.mubr.bf16.mxu1 %v538_v37  ;;  %vm500_vm1 = vcmp.gt.f32.partialorder %v483_v39, 0.0  ;;  %v516_v44 = vmul.f32 0.1, %v483_v39  ;;  %v536_v45 = vpack.c.bf16 %v524_v22, %v520_v1  ;;  %v531_v46 = vsel %vm499_vm0, %v481_v31, %v515_v38  ;;  %v2547_v59 = vld [vmem:[#allocation2 + $0x2c4] ss:$16 sps:$4 sm:$0xff]  }
 0x13e   : > { %1374 = vmatmul.mubr.bf16.gmra.mrb[12].mxu0 %v537_v34  ;;  %1480 = vmatmul.mubr.bf16.gmra.mrb[12].mxu1 %v537_v34  ;;  %v3002_v24 = vpack.c.bf16 %v531_v46, %v527_v43  ;;  %v2550_v60 = vld [vmem:[#allocation2 + $0x2cc] ss:$16 sps:$4 sm:$0xff]   ;;  %v2545_v61 = vld [vmem:[#allocation2 + $0x2c0] ss:$16 sps:$4 sm:$0xff]   ;;  %v2548_v62 = vld [vmem:[#allocation2 + $0x2c8] ss:$16 sps:$4 sm:$0xff]  }
 0x13f   : > { %1389 = vmatpush1.bf16.msra.mxu0 %v2521_v32  ;;  %1495 = vmatpush1.bf16.msra.mxu1 %v2524_v36  ;;  %v532_v49 = vsel %vm500_vm1, %v483_v39, %v516_v44  ;;  %v2553_v63 = vld [vmem:[#allocation2 + $0x2e4] ss:$16 sps:$4 sm:$0xff]   ;;  %v2556_v0 = vld [vmem:[#allocation2 + $0x2ec] ss:$16 sps:$4 sm:$0xff]   ;;  %v2551_v1 = vld [vmem:[#allocation2 + $0x2e0] ss:$16 sps:$4 sm:$0xff]  }
 0x140   : > { %1390 = vmatprep.subr.bf16.mxu0 %v2529_v40  ;;  %1496 = vmatprep.subr.bf16.mxu1 %v2532_v41  ;;  %v3004_v52 = vpack.c.bf16 %v532_v49, %v528_v42  ;;  %v2554_v2 = vld [vmem:[#allocation2 + $0x2e8] ss:$16 sps:$4 sm:$0xff]   ;;  %v2559_v3 = vld [vmem:[#allocation2 + $0x304] ss:$16 sps:$4 sm:$0xff]   ;;  %v2562_v4 = vld [vmem:[#allocation2 + $0x30c] ss:$16 sps:$4 sm:$0xff]  }
 0x141   : > { %1416 = vmatprep.mubr.bf16.mxu0 %v536_v45  ;;  %1522 = vmatprep.mubr.bf16.mxu1 %v536_v45  ;;  %v2557_v5 = vld [vmem:[#allocation2 + $0x300] ss:$16 sps:$4 sm:$0xff]   ;;  %v2560_v6 = vld [vmem:[#allocation2 + $0x308] ss:$16 sps:$4 sm:$0xff]   ;;  %v2565_v7 = vld [vmem:[#allocation2 + $0x324] ss:$16 sps:$4 sm:$0xff]  }
 0x142   : > { %v2568_v8 = vld [vmem:[#allocation2 + $0x32c] ss:$16 sps:$4 sm:$0xff]   ;;  %v2563_v9 = vld [vmem:[#allocation2 + $0x320] ss:$16 sps:$4 sm:$0xff]   ;;  %v2566_v10 = vld [vmem:[#allocation2 + $0x328] ss:$16 sps:$4 sm:$0xff]  }
 0x143   : > { %1391 = vmatpush1.bf16.msra.mxu0 %v2527_v47  ;;  %1497 = vmatpush1.bf16.msra.mxu1 %v2530_v48  ;;  %v2571_v12 = vld [vmem:[#allocation2 + $0x344] ss:$16 sps:$4 sm:$0xff]   ;;  %v2574_v13 = vld [vmem:[#allocation2 + $0x34c] ss:$16 sps:$4 sm:$0xff]   ;;  %v2569_v16 = vld [vmem:[#allocation2 + $0x340] ss:$16 sps:$4 sm:$0xff]  }
 0x144   : > { %1392 = vmatprep.subr.bf16.mxu0 %v2535_v50  ;;  %1498 = vmatprep.subr.bf16.mxu1 %v2538_v51  ;;  %v2572_v20 = vld [vmem:[#allocation2 + $0x348] ss:$16 sps:$4 sm:$0xff]   ;;  %v2577_v23 = vld [vmem:[#allocation2 + $0x364] ss:$16 sps:$4 sm:$0xff]   ;;  %v2580_v25 = vld [vmem:[#allocation2 + $0x36c] ss:$16 sps:$4 sm:$0xff]  }
 0x145   : > { %v2575_v26 = vld [vmem:[#allocation2 + $0x360] ss:$16 sps:$4 sm:$0xff]   ;;  %v2578_v27 = vld [vmem:[#allocation2 + $0x368] ss:$16 sps:$4 sm:$0xff]   ;;  %v2583_v21 = vld [vmem:[#allocation2 + $0x384] ss:$16 sps:$4 sm:$0xff]  }
 0x146   : > { %v2586_v28 = vld [vmem:[#allocation2 + $0x38c] ss:$16 sps:$4 sm:$0xff]   ;;  %v2581_v29 = vld [vmem:[#allocation2 + $0x380] ss:$16 sps:$4 sm:$0xff]   ;;  %v2584_v30 = vld [vmem:[#allocation2 + $0x388] ss:$16 sps:$4 sm:$0xff]  }
 0x147   : > { %1393 = vmatpush1.bf16.msra.mxu0 %v2533_v53  ;;  %1499 = vmatpush1.bf16.msra.mxu1 %v2536_v54  ;;  %v2589_v31 = vld [vmem:[#allocation2 + $0x3a4] ss:$16 sps:$4 sm:$0xff]   ;;  %v2592_v32 = vld [vmem:[#allocation2 + $0x3ac] ss:$16 sps:$4 sm:$0xff]   ;;  %v2587_v33 = vld [vmem:[#allocation2 + $0x3a0] ss:$16 sps:$4 sm:$0xff]  }
 0x148   : > { %1394 = vmatprep.subr.bf16.mxu0 %v2541_v55  ;;  %1500 = vmatprep.subr.bf16.mxu1 %v2544_v56  ;;  %v2590_v34 = vld [vmem:[#allocation2 + $0x3a8] ss:$16 sps:$4 sm:$0xff]   ;;  %v2595_v35 = vld [vmem:[#allocation2 + $0x3c4] ss:$16 sps:$4 sm:$0xff]   ;;  %v2598_v36 = vld [vmem:[#allocation2 + $0x3cc] ss:$16 sps:$4 sm:$0xff]  }
 0x149   : > { %v2593_v37 = vld [vmem:[#allocation2 + $0x3c0] ss:$16 sps:$4 sm:$0xff]   ;;  %v2596_v38 = vld [vmem:[#allocation2 + $0x3c8] ss:$16 sps:$4 sm:$0xff]   ;;  %v2601_v39 = vld [vmem:[#allocation2 + $0x3e4] ss:$16 sps:$4 sm:$0xff]  }
 0x14a   : > { %v2604_v40 = vld [vmem:[#allocation2 + $0x3ec] ss:$16 sps:$4 sm:$0xff]   ;;  %v2599_v41 = vld [vmem:[#allocation2 + $0x3e0] ss:$16 sps:$4 sm:$0xff]   ;;  %v2602_v22 = vld [vmem:[#allocation2 + $0x3e8] ss:$16 sps:$4 sm:$0xff]  }
 0x14b   : > { %1395 = vmatpush1.bf16.msra.mxu0 %v2539_v57  ;;  %1501 = vmatpush1.bf16.msra.mxu1 %v2542_v58  ;;  %v2605_v42 = vld [vmem:[#allocation5 + $0x40] sm:$0xff]   ;;  %v2609_v46 = vld [vmem:[#allocation5 + $0x48] sm:$0xff]   ;;  %v2613_v50 = vld [vmem:[#allocation5 + $0x50] sm:$0xff]  }
 0x14c   : > { %1396 = vmatprep.subr.bf16.mxu0 %v2547_v59  ;;  %1502 = vmatprep.subr.bf16.mxu1 %v2550_v60  ;;  %v2606_v43 = vld [vmem:[#allocation5 + $0xc0] sm:$0xff]   ;;  %v2610_v47 = vld [vmem:[#allocation5 + $0xc8] sm:$0xff]   ;;  %v2614_v51 = vld [vmem:[#allocation5 + $0xd0] sm:$0xff]  }
 0x14d   : > { %v2607_v44 = vld [vmem:[#allocation5] sm:$0xff]   ;;  %v2611_v48 = vld [vmem:[#allocation5 + $0x8] sm:$0xff]   ;;  %v2615_v53 = vld [vmem:[#allocation5 + $0x10] sm:$0xff]  }
 0x14e   : > { %v2608_v45 = vld [vmem:[#allocation5 + $0x80] sm:$0xff]   ;;  %v2612_v49 = vld [vmem:[#allocation5 + $0x88] sm:$0xff]   ;;  %v2616_v54 = vld [vmem:[#allocation5 + $0x90] sm:$0xff]  }
 0x14f   : > { %1397 = vmatpush1.bf16.msra.mxu0 %v2545_v61  ;;  %1503 = vmatpush1.bf16.msra.mxu1 %v2548_v62  ;;  %v2617_v55 = vld [vmem:[#allocation5 + $0x58] sm:$0xff]   ;;  %v2621_v57 = vld [vmem:[#allocation5 + $0x60] sm:$0xff]   ;;  %v2625_v61 = vld [vmem:[#allocation5 + $0x68] sm:$0xff]  }
 0x150   : > { %1398 = vmatprep.subr.bf16.mxu0 %v2553_v63  ;;  %1504 = vmatprep.subr.bf16.mxu1 %v2556_v0  ;;  %v2620_v56 = vld [vmem:[#allocation5 + $0x98] sm:$0xff]   ;;  %v2622_v58 = vld [vmem:[#allocation5 + $0xe0] sm:$0xff]   ;;  %v2626_v62 = vld [vmem:[#allocation5 + $0xe8] sm:$0xff]  }
 0x151   : > { %v2623_v59 = vld [vmem:[#allocation5 + $0x20] sm:$0xff]   ;;  %v2627_v63 = vld [vmem:[#allocation5 + $0x28] sm:$0xff]   ;;  %v2629_v0 = vld [vmem:[#allocation5 + $0x70] sm:$0xff]  }
 0x152   : > { %v2624_v60 = vld [vmem:[#allocation5 + $0xa0] sm:$0xff]  }
 0x153   : > { %1399 = vmatpush1.bf16.msra.mxu0 %v2551_v1  ;;  %1505 = vmatpush1.bf16.msra.mxu1 %v2554_v2  ;;  %v2630_v1 = vld [vmem:[#allocation5 + $0xf0] sm:$0xff]  }
 0x154   : > { %1400 = vmatprep.subr.bf16.mxu0 %v2559_v3  ;;  %1506 = vmatprep.subr.bf16.mxu1 %v2562_v4  ;;  %v2631_v2 = vld [vmem:[#allocation5 + $0x30] sm:$0xff]   ;;  %v2633_v4 = vld [vmem:[#allocation5 + $0x78] sm:$0xff]  }
 0x155   : > { %v2632_v3 = vld [vmem:[#allocation5 + $0xb0] sm:$0xff]  }
 0x157   : > { %1401 = vmatpush1.bf16.msra.mxu0 %v2557_v5  ;;  %1507 = vmatpush1.bf16.msra.mxu1 %v2560_v6  ;;  %v2634_v5 = vld [vmem:[#allocation5 + $0xf8] sm:$0xff]  }
 0x158   : > { %1402 = vmatprep.subr.bf16.mxu0 %v2565_v7  ;;  %1508 = vmatprep.subr.bf16.mxu1 %v2568_v8  ;;  %v2635_v6 = vld [vmem:[#allocation5 + $0x38] sm:$0xff]   ;;  %v669_v8 = vld [vmem:[%s3114_s4] sm:$0xf] }
 0x159   : > { %v2636_v7 = vld [vmem:[#allocation5 + $0xb8] sm:$0xff]  }
 0x15b   : > { %1403 = vmatpush1.bf16.msra.mxu0 %v2563_v9  ;;  %1509 = vmatpush1.bf16.msra.mxu1 %v2566_v10  ;;  %v3017_v9 = vrot.slane %v669_v8, %v321_v15  ;;  %v3021_v10 = vrot.slane %v669_v8, %v329_v18 }
 0x15c   : > { %1404 = vmatprep.subr.bf16.mxu0 %v2571_v12  ;;  %1510 = vmatprep.subr.bf16.mxu1 %v2574_v13  ;;  %v3025_v12 = vrot.slane %v669_v8, %v325_v17  ;;  %v3029_v13 = vrot.slane %v669_v8, %v333_v19 }
 0x15f   : > { %1405 = vmatpush1.bf16.msra.mxu0 %v2569_v16  ;;  %1511 = vmatpush1.bf16.msra.mxu1 %v2572_v20 }
 0x160   : > { %1406 = vmatprep.subr.bf16.mxu0 %v2577_v23  ;;  %1512 = vmatprep.subr.bf16.mxu1 %v2580_v25 }
 0x163   : > { %1407 = vmatpush1.bf16.msra.mxu0 %v2575_v26  ;;  %1513 = vmatpush1.bf16.msra.mxu1 %v2578_v27 }
 0x164   : > { %1408 = vmatprep.subr.bf16.mxu0 %v2583_v21  ;;  %1514 = vmatprep.subr.bf16.mxu1 %v2586_v28 }
 0x167   : > { %1409 = vmatpush1.bf16.msra.mxu0 %v2581_v29  ;;  %1515 = vmatpush1.bf16.msra.mxu1 %v2584_v30 }
 0x168   : > { %1410 = vmatprep.subr.bf16.mxu0 %v2589_v31  ;;  %1516 = vmatprep.subr.bf16.mxu1 %v2592_v32 }
 0x16b   : > { %1411 = vmatpush1.bf16.msra.mxu0 %v2587_v33  ;;  %1517 = vmatpush1.bf16.msra.mxu1 %v2590_v34 }
 0x16c   : > { %1412 = vmatprep.subr.bf16.mxu0 %v2595_v35  ;;  %1518 = vmatprep.subr.bf16.mxu1 %v2598_v36 }
 0x16f   : > { %1413 = vmatpush1.bf16.msra.mxu0 %v2593_v37  ;;  %1519 = vmatpush1.bf16.msra.mxu1 %v2596_v38 }
 0x170   : > { %1414 = vmatprep.subr.bf16.mxu0 %v2601_v39  ;;  %1520 = vmatprep.subr.bf16.mxu1 %v2604_v40 }
 0x173   : > { %1415 = vmatpush1.bf16.msra.mxu0 %v2599_v41  ;;  %1521 = vmatpush1.bf16.msra.mxu1 %v2602_v22 }
 0x174   : > { %2252 = vmatprep.subr.bf16.mxu0 %v2605_v42  ;;  %2280 = vmatprep.subr.bf16.mxu1 %v2606_v43 }
 0x176   : > { %1417 = vmatmul.mubr.bf16.vlgmr.msra.gmra.mrb[8].mxu0 %v2990_v11  ;;  %1523 = vmatmul.mubr.bf16.vlgmr.msra.gmra.mrb[8].mxu1 %v2990_v11  ;;  %v2618_v11 = vld [vmem:[#allocation5 + $0xd8] sm:$0xff]  }
 0x177   : > { %1426 = vmatprep.mubr.bf16.mxu0 %v3004_v52  ;;  %1532 = vmatprep.mubr.bf16.mxu1 %v3004_v52  ;;  %v2619_v52 = vld [vmem:[#allocation5 + $0x18] sm:$0xff]  }
 0x178   : > { %2253 = vmatpush3.bf16.msra.mxu0 %v2607_v44  ;;  %2281 = vmatpush3.bf16.msra.mxu1 %v2608_v45 }
 0x179   : > { %2254 = vmatprep.subr.bf16.mxu0 %v2609_v46  ;;  %2282 = vmatprep.subr.bf16.mxu1 %v2610_v47 }
 0x17c   : > { %2255 = vmatpush3.bf16.msra.mxu0 %v2611_v48  ;;  %2283 = vmatpush3.bf16.msra.mxu1 %v2612_v49 }
 0x17d   : > { %2256 = vmatprep.subr.bf16.mxu0 %v2613_v50  ;;  %2284 = vmatprep.subr.bf16.mxu1 %v2614_v51 }
 0x17e   : > { %1427 = vmatmul.mubr.bf16.gmra.mrb[12].mxu0 %v3002_v24  ;;  %1533 = vmatmul.mubr.bf16.gmra.mrb[12].mxu1 %v3002_v24  ;;  %v2628_v24 = vld [vmem:[#allocation5 + $0xa8] sm:$0xff]  }
 0x180   : > { %2257 = vmatpush3.bf16.msra.mxu0 %v2615_v53  ;;  %2285 = vmatpush3.bf16.msra.mxu1 %v2616_v54 }
 0x181   : > { %2258 = vmatprep.subr.bf16.mxu0 %v2617_v55  ;;  %2286 = vmatprep.subr.bf16.mxu1 %v2618_v11 }
 0x184   : > { %2259 = vmatpush3.bf16.msra.mxu0 %v2619_v52  ;;  %2287 = vmatpush3.bf16.msra.mxu1 %v2620_v56 }
 0x185   : > { %2260 = vmatprep.subr.bf16.mxu0 %v2621_v57  ;;  %2288 = vmatprep.subr.bf16.mxu1 %v2622_v58 }
 0x188   : > { %2261 = vmatpush3.bf16.msra.mxu0 %v2623_v59  ;;  %2289 = vmatpush3.bf16.msra.mxu1 %v2624_v60 }
 0x189   : > { %2262 = vmatprep.subr.bf16.mxu0 %v2625_v61  ;;  %2290 = vmatprep.subr.bf16.mxu1 %v2626_v62 }
 0x18c   : > { %2263 = vmatpush3.bf16.msra.mxu0 %v2627_v63  ;;  %2291 = vmatpush3.bf16.msra.mxu1 %v2628_v24 }
 0x18d   : > { %2264 = vmatprep.subr.bf16.mxu0 %v2629_v0  ;;  %2292 = vmatprep.subr.bf16.mxu1 %v2630_v1 }
 0x190   : > { %2265 = vmatpush3.bf16.msra.mxu0 %v2631_v2  ;;  %2293 = vmatpush3.bf16.msra.mxu1 %v2632_v3 }
 0x191   : > { %2266 = vmatprep.subr.bf16.mxu0 %v2633_v4  ;;  %2294 = vmatprep.subr.bf16.mxu1 %v2634_v5 }
 0x194   : > { %2267 = vmatpush3.bf16.msra.mxu0 %v2635_v6  ;;  %2295 = vmatpush3.bf16.msra.mxu1 %v2636_v7 }
 0x249   : > { %v1418_v16 = vpop.f32.mrb[8].mxu0  ;;  %v1524_v20 = vpop.f32.mrb[8].mxu1 }
 0x24a   : > { %v2308_v23 = vadd.f32 %v1418_v16, %v3017_v9  ;;  %v2316_v25 = vadd.f32 %v1524_v20, %v3021_v10  ;;  %v1420_v15 = vpop.f32.mrb[9].mxu0  ;;  %v1526_v26 = vpop.f32.mrb[9].mxu1 }
 0x24b   : > { %v2309_v27 = vadd.f32 %v1420_v15, %v3025_v12  ;;  %v2317_v18 = vadd.f32 %v1526_v26, %v3029_v13  ;;  %v1422_v21 = vpop.f32.mrb[10].mxu0  ;;  %v1528_v28 = vpop.f32.mrb[10].mxu1 }
 0x24c   : > { %vm1543_vm2 = vcmp.gt.f32.partialorder %v2308_v23, 0.0  ;;  %v1559_v17 = vmul.f32 0.1, %v2308_v23  ;;  %vm1545_vm3 = vcmp.gt.f32.partialorder %v2316_v25, 0.0  ;;  %v1561_v14 = vmul.f32 0.1, %v2316_v25 }
 0x24d   : > { %vm1544_vm4 = vcmp.gt.f32.partialorder %v2309_v27, 0.0  ;;  %v1560_v19 = vmul.f32 0.1, %v2309_v27  ;;  %vm1546_vm5 = vcmp.gt.f32.partialorder %v2317_v18, 0.0  ;;  %v1562_v29 = vmul.f32 0.1, %v2317_v18 }
 0x24e   : > { %v2310_v30 = vadd.f32 %v1422_v21, %v3017_v9  ;;  %v2318_v31 = vadd.f32 %v1528_v28, %v3021_v10  ;;  %v1424_v32 = vpop.f32.mrb[11].mxu0  ;;  %v1530_v33 = vpop.f32.mrb[11].mxu1  ;;  %v1575_v34 = vsel %vm1543_vm2, %v2308_v23, %v1559_v17  ;;  %v1577_v35 = vsel %vm1545_vm3, %v2316_v25, %v1561_v14  ;;  %v2213_v17 = vld [vmem:[%s3116_s6] ss:$0 sm:$0xff] }
 0x24f   : > { %v2311_v36 = vadd.f32 %v1424_v32, %v3025_v12  ;;  %v2319_v37 = vadd.f32 %v1530_v33, %v3029_v13  ;;  %v1576_v45 = vsel %vm1544_vm4, %v2309_v27, %v1560_v19  ;;  %v1578_v46 = vsel %vm1546_vm5, %v2317_v18, %v1562_v29 }
 0x250   : > { %vm1547_vm6 = vcmp.gt.f32.partialorder %v2310_v30, 0.0  ;;  %v1563_v38 = vmul.f32 0.1, %v2310_v30  ;;  %vm1549_vm7 = vcmp.gt.f32.partialorder %v2318_v31, 0.0  ;;  %v1565_v39 = vmul.f32 0.1, %v2318_v31 }
 0x251   : > { %vm1548_vm8 = vcmp.gt.f32.partialorder %v2311_v36, 0.0  ;;  %v1564_v40 = vmul.f32 0.1, %v2311_v36  ;;  %vm1550_vm9 = vcmp.gt.f32.partialorder %v2319_v37, 0.0  ;;  %v1566_v41 = vmul.f32 0.1, %v2319_v37 }
 0x252   : > { %v1579_v22 = vsel %vm1547_vm6, %v2310_v30, %v1563_v38  ;;  %v1581_v42 = vsel %vm1549_vm7, %v2318_v31, %v1565_v39  ;;  %v1428_v43 = vpop.f32.mrb[12].mxu0  ;;  %v1534_v44 = vpop.f32.mrb[12].mxu1 }
 0x253   : > { %v1591_v47 = vpack.c.bf16 %v1579_v22, %v1575_v34  ;;  %v1593_v48 = vpack.c.bf16 %v1581_v42, %v1577_v35  ;;  %v2312_v49 = vadd.f32 %v1428_v43, %v3017_v9  ;;  %v2320_v50 = vadd.f32 %v1534_v44, %v3021_v10  ;;  %v1430_v51 = vpop.f32.mrb[13].mxu0  ;;  %v1536_v53 = vpop.f32.mrb[13].mxu1 }
 0x254   : > { %v2313_v54 = vadd.f32 %v1430_v51, %v3025_v12  ;;  %v2321_v55 = vadd.f32 %v1536_v53, %v3029_v13  ;;  %v1432_v11 = vpop.f32.mrb[14].mxu0  ;;  %v1538_v52 = vpop.f32.mrb[14].mxu1  ;;  %v1580_v56 = vsel %vm1548_vm8, %v2311_v36, %v1564_v40  ;;  %v1582_v57 = vsel %vm1550_vm9, %v2319_v37, %v1566_v41 }
 0x255   : > { %vm1551_vm10 = vcmp.gt.f32.partialorder %v2312_v49, 0.0  ;;  %v1567_v58 = vmul.f32 0.1, %v2312_v49  ;;  %vm1553_vm11 = vcmp.gt.f32.partialorder %v2320_v50, 0.0  ;;  %v1569_v59 = vmul.f32 0.1, %v2320_v50 }
 0x256   : > { %vm1552_vm12 = vcmp.gt.f32.partialorder %v2313_v54, 0.0  ;;  %v1568_v60 = vmul.f32 0.1, %v2313_v54  ;;  %vm1554_vm13 = vcmp.gt.f32.partialorder %v2321_v55, 0.0  ;;  %v1570_v61 = vmul.f32 0.1, %v2321_v55 }
 0x257   : > { %v2314_v62 = vadd.f32 %v1432_v11, %v3017_v9  ;;  %v2322_v63 = vadd.f32 %v1538_v52, %v3021_v10  ;;  %v1434_v24 = vpop.f32.mrb[15].mxu0  ;;  %v1540_v0 = vpop.f32.mrb[15].mxu1  ;;  %v1592_v1 = vpack.c.bf16 %v1580_v56, %v1576_v45  ;;  %v1594_v2 = vpack.c.bf16 %v1582_v57, %v1578_v46 }
 0x258   : > { %v2315_v3 = vadd.f32 %v1434_v24, %v3025_v12  ;;  %v2323_v4 = vadd.f32 %v1540_v0, %v3029_v13  ;;  %v1584_v5 = vsel %vm1552_vm12, %v2313_v54, %v1568_v60  ;;  %v1586_v6 = vsel %vm1554_vm13, %v2321_v55, %v1570_v61 }
 0x259   : > { %vm1555_vm14 = vcmp.gt.f32.partialorder %v2314_v62, 0.0  ;;  %v1571_v7 = vmul.f32 0.1, %v2314_v62  ;;  %vm1557_vm15 = vcmp.gt.f32.partialorder %v2322_v63, 0.0  ;;  %v1573_v8 = vmul.f32 0.1, %v2322_v63  ;;  %1894 = vmatprep.mubr.bf16.mxu0 %v1592_v1  ;;  %1943 = vmatprep.mubr.bf16.mxu1 %v1594_v2 }
 0x25a   : > { %vm1556_vm0 = vcmp.gt.f32.partialorder %v2315_v3, 0.0  ;;  %v1572_v9 = vmul.f32 0.1, %v2315_v3  ;;  %vm1558_vm1 = vcmp.gt.f32.partialorder %v2323_v4, 0.0  ;;  %v1574_v10 = vmul.f32 0.1, %v2323_v4  ;;  %1895 = vmatmul.mubr.bf16.vlgmr.msra.gmra.mrb[16].mxu0 %v1591_v47  ;;  %1944 = vmatmul.mubr.bf16.vlgmr.msra.gmra.mrb[16].mxu1 %v1593_v48 }
 0x25b   : > { %v1583_v16 = vsel %vm1551_vm10, %v2312_v49, %v1567_v58  ;;  %v1587_v12 = vsel %vm1555_vm14, %v2314_v62, %v1571_v7  ;;  %v1585_v13 = vsel %vm1553_vm11, %v2320_v50, %v1569_v59  ;;  %v1589_v20 = vsel %vm1557_vm15, %v2322_v63, %v1573_v8 }
 0x25c   : > { %v1588_v23 = vsel %vm1556_vm0, %v2315_v3, %v1572_v9  ;;  %v1590_v25 = vsel %vm1558_vm1, %v2323_v4, %v1574_v10  ;;  %v1595_v15 = vpack.c.bf16 %v1587_v12, %v1583_v16  ;;  %v1597_v26 = vpack.c.bf16 %v1589_v20, %v1585_v13 }
 0x25d   : > { %v1596_v27 = vpack.c.bf16 %v1588_v23, %v1584_v5  ;;  %v1598_v18 = vpack.c.bf16 %v1590_v25, %v1586_v6 }
 0x25f   : > { %1902 = vmatprep.mubr.bf16.mxu0 %v1596_v27  ;;  %1951 = vmatprep.mubr.bf16.mxu1 %v1598_v18 }
 0x262   : > { %1903 = vmatmul.mubr.bf16.gmra.mrb[20].mxu0 %v1595_v15  ;;  %1952 = vmatmul.mubr.bf16.gmra.mrb[20].mxu1 %v1597_v26 }
 0x32d   : > { %v2268_v21 = vpop.f32.mrb[16].mxu0  ;;  %v2296_v28 = vpop.f32.mrb[16].mxu1 }
 0x32e   : > { %v2269_v14 = vpop.f32.mrb[17].mxu0  ;;  %v2297_v19 = vpop.f32.mrb[17].mxu1 }
 0x32f   : > { %v2270_v29 = vadd.f32 %v2269_v14, %v2268_v21  ;;  %v2298_v30 = vadd.f32 %v2297_v19, %v2296_v28  ;;  %v2271_v31 = vpop.f32.mrb[18].mxu0  ;;  %v2299_v32 = vpop.f32.mrb[18].mxu1 }
 0x330   : > { %v2272_v33 = vpop.f32.mrb[19].mxu0  ;;  %v2300_v34 = vpop.f32.mrb[19].mxu1 }
 0x331   : > { %v1897_v35 = vadd.f32 %v2270_v29, %v2213_v17  ;;  %v2273_v36 = vadd.f32 %v2272_v33, %v2271_v31  ;;  %v2301_v37 = vadd.f32 %v2300_v34, %v2299_v32 }
 0x333   : > { %v1946_v38 = vadd.f32 %v2298_v30, %v1897_v35  ;;  %v1900_v39 = vadd.f32 %v2273_v36, %v2213_v17 }
 0x335   : > { %1960 = vst [vmem:[%s302_s18] sm:$0xff] %v1946_v38  ;;  %v1949_v40 = vadd.f32 %v2301_v37, %v1900_v39  ;;  %v2274_v41 = vpop.f32.mrb[20].mxu0  ;;  %v2302_v22 = vpop.f32.mrb[20].mxu1 }
 0x336   : > { %v2275_v42 = vpop.f32.mrb[21].mxu0  ;;  %v2303_v43 = vpop.f32.mrb[21].mxu1 }
 0x337   : > { %1961 = vst [vmem:[%s302_s18 + $0x8] sm:$0xff] %v1949_v40  ;;  %v2276_v44 = vadd.f32 %v2275_v42, %v2274_v41  ;;  %v2304_v45 = vadd.f32 %v2303_v43, %v2302_v22  ;;  %v2277_v46 = vpop.f32.mrb[22].mxu0  ;;  %v2305_v47 = vpop.f32.mrb[22].mxu1 }
 0x338   : > { %v2278_v48 = vpop.f32.mrb[23].mxu0  ;;  %v2306_v49 = vpop.f32.mrb[23].mxu1 }
 0x339   : > { %v1905_v50 = vadd.f32 %v2276_v44, %v2213_v17  ;;  %v2279_v51 = vadd.f32 %v2278_v48, %v2277_v46  ;;  %v2307_v53 = vadd.f32 %v2306_v49, %v2305_v47 }
 0x33b   : > { %v1954_v54 = vadd.f32 %v2304_v45, %v1905_v50  ;;  %v1908_v55 = vadd.f32 %v2279_v51, %v2213_v17 }
 0x33d   : > { %1962 = vst [vmem:[%s302_s18 + $0x10] sm:$0xff] %v1954_v54  ;;  %v1957_v11 = vadd.f32 %v2307_v53, %v1908_v55 }
 0x33f   : > { %1963 = vst [vmem:[%s302_s18 + $0x18] sm:$0xff] %v1957_v11 }
 0x340   : > { %2706 = shalt.err (!%p2703_p11)
}
 0x341   : > { %s2707_s14 = scalar_lea.hbm %s3065_s29, 512  ;;  %s2711_s16 = scalar_lea.hbm %s3117_s7, 1024 }
 0x342   : > { %p2708_p13 = scmp.ne.s32.totalorder %s3065_s29, %s2707_s14  ;;  %p2712_p6 = scmp.lt.u32.totalorder %s3065_s29, %s3117_s7 }
 0x343   : > { %p2713_p9 = scmp.lt.u32.totalorder %s2711_s16, %s2707_s14  ;;  %p2715_p10 = scmp.lt.u32.totalorder %s2707_s14, %s3065_s29 }
 0x344   : > { %p2709_p0 = pnand %p2708_p13, %p3131_p1 }
 0x345   : > { %p2714_p12 = por %p2713_p9, %p2712_p6 }
 0x346   : > { %p2710_p5 = pneg %p2709_p0 }
 0x347   : > { %p2716_p2 = por %p2715_p10, %p2714_p12 }
 0x349   : > { %p2717_p3 = pnand %p2716_p2, %p2710_p5 }
 0x34b   : > { %2720 = shalt.err (!%p2717_p3)
}
 0x34c   : > { %s2773_s21 = smov 128   ;;  %s2774_s22 = smov 8  }
 0x34d   : > { %2348 = dma.vmem_to_hbm [thread:$0]  (%p3131_p1), %s3060_s20, 512, %s3065_s29, %s3069_s8, %s2773_s21, %s2773_s21, %s2774_s22  }
 0x34e PF: > { %p2365_p4 = scmp.ge.s32.totalorder %s2763_s27, 2  ;;  %s1993_s23 = sand.u32 1, %s2751_s24  }
 0x34f   : > { %p3132_p7 = scmp.ne.s32.totalorder %s3123_s12, 0  ;;  %s1994_s9 = scalar_lea.sflag [#allocation4], %s1993_s23 }
 0x351   : > { %p2358_p8 = pnand %p2365_p4, %p3132_p7 }
 0x353   : > { %2746 = dma.done.wait (!%p2358_p8), %s1994_s9, 512  }
 0x354   : > { %2748 = vsyncadd (!%p2358_p8), %s1994_s9, 4294966784  ;;  %s3133_s28 = sld [smem:[#allocation11_spill]]  ;;  %p19_p11 = scmp.ge.s32.totalorder %s2840_s30, 4  }
 0x355   : > { %s3134_s24 = smov %s2755_s25  ;;  %s3135_s25 = smov %s2759_s26 }
 0x356   : > { %s3137_s27 = smov %s2840_s30  ;;  %21 = sbr.rel (!%p19_p11) target bundleno = 5 (0x5), region = 92 }
 0x35a   : > { %s3136_s26 = smov %s3133_s28 }
 0x35d   :  { %1999 = vsyncpa [#allocation3], 1 }
 0x35e   :  { %2001 = vsyncpa [#allocation3 + $0x1], 1 }
 0x35f   :  { %2002 = vsyncpa [#allocation6], 1 }
 0x360   :  { %2003 = vsyncpa [#allocation4], 1 }
 0x361   :  { %2005 = vsyncpa [#allocation4 + $0x1], 1 }

</bundles_post_ra>
